<compile_context>
chip_gen: v5e
topology: v5e:2x2
jax: 0.10.0
libtpu: 0.0.40
codegen_flags: <defaults>
</compile_context>

<pallas_src>
import numpy as np
import jax
import jax.numpy as jnp
from jax import lax
from jax.experimental import pallas as pl
from jax.experimental.pallas import tpu as pltpu


# -----------------------------------------------------------------------------
# Deterministic parameter construction.
# Mirrors HierarchicalLLLoss.__init__ for a balanced binary hierarchy of depth
# D over C = 2**D leaf classes (alphabetical leaf order == index order).
# TODO(synk): the original __init__ builds these from nltk.Tree objects; that
# construction has no in-script equivalent, so a deterministic synthetic
# hierarchy is used. The forward-pass math is unchanged.
# -----------------------------------------------------------------------------
def build_hierarchy_params(depth: int):
    C = 2 ** depth          # num_classes
    E = depth               # num_edges (leaf -> child-of-root path length)
    onehot_num = np.zeros((C, C, E), dtype=np.float32)
    onehot_den = np.zeros((C, C, E), dtype=np.float32)
    weights = np.zeros((C, E), dtype=np.float32)
    for i in range(C):
        for j in range(E):
            for m in range(C):
                if (m >> j) == (i >> j):
                    onehot_num[i, m, j] = 1.0
            weights[i, j] = (0.5 ** j) * (1.0 + 0.05 * ((i >> j) % 3))
        for j in range(E - 1):
            for m in range(C):
                if (m >> (j + 1)) == (i >> (j + 1)):
                    onehot_den[i, m, j] = 1.0
        onehot_den[i, :, E - 1] = 1.0  # top level: all classes (root)
    return jnp.asarray(onehot_num), jnp.asarray(onehot_den), jnp.asarray(weights)


# -----------------------------------------------------------------------------
# Kernel: one grid step handles TB samples; writes one partial sum per step.
#   target_ref : SMEM int32 (B_pad,)             (scalar prefetch)
#   x_ref      : VMEM f32   (TB, C)              per-step batch block
#   num_ref    : VMEM bf16  (C, E, C)            resident onehot_num, class-last
#   den_ref    : VMEM bf16  (C, E, C)            resident onehot_den, class-last
#   w_ref      : VMEM f32   (C, E, 1)            resident weights
#   out_ref    : VMEM f32   (1, 1, 1)            partial sum for this block
# -----------------------------------------------------------------------------
def _hll_kernel(target_ref, x_ref, num_ref, den_ref, w_ref, out_ref):
    g = pl.program_id(0)
    tb = x_ref.shape[0]

    def body(s, acc):
        t = target_ref[g * tb + s]                        # dynamic SMEM scalar
        xs = x_ref[pl.ds(s, 1), :]                        # (1, C) f32
        mn = num_ref[t].astype(jnp.float32)               # (E, C) gather, cast up
        md = den_ref[t].astype(jnp.float32)               # (E, C)
        wt = w_ref[t]                                     # (E, 1) f32

        # bmm(inputs[:, None, :], onehot[target]) for this sample, done as a
        # lane-dense VPU multiply + XLU reduce over the class axis.
        num = jnp.sum(xs * mn, axis=-1, keepdims=True)    # (E, 1)
        den = jnp.sum(xs * md, axis=-1, keepdims=True)    # (E, 1)

        # num[idx] = -log(num[idx] / den[idx]); entries with num == 0 stay 0.
        # Zero-padded batch rows give num == 0 everywhere -> contribute 0.
        mask = num != 0.0
        num_s = jnp.where(mask, num, 1.0)
        den_s = jnp.where(mask, den, 1.0)
        val = jnp.where(mask, -jnp.log(num_s / den_s), 0.0)

        # torch.flip along the edge axis is a no-op under the subsequent sum.
        return acc + jnp.sum(wt * val, keepdims=True)     # (1, 1)

    acc = lax.fori_loop(0, tb, body, jnp.zeros((1, 1), jnp.float32), unroll=True)
    out_ref[0] = acc


def hierarchical_ll_loss(inputs, target, onehot_num, onehot_den, weights, *, tb=8):
    B, C = inputs.shape
    E = weights.shape[1]
    b_pad = ((B + tb - 1) // tb) * tb
    G = b_pad // tb

    # Pad batch to a multiple of TB; padded rows are all-zero -> contribute 0.
    x = jnp.zeros((b_pad, C), jnp.float32).at[:B].set(inputs.astype(jnp.float32))
    tgt = jnp.zeros((b_pad,), jnp.int32).at[:B].set(target.astype(jnp.int32))

    # Class axis last (lane-dense); 0/1 tables in bf16 (lossless), weights f32.
    num_t = jnp.transpose(onehot_num, (0, 2, 1)).astype(jnp.bfloat16)   # (C, E, C)
    den_t = jnp.transpose(onehot_den, (0, 2, 1)).astype(jnp.bfloat16)   # (C, E, C)
    w3 = weights.astype(jnp.float32).reshape(C, E, 1)                   # (C, E, 1)

    grid_spec = pltpu.PrefetchScalarGridSpec(
        num_scalar_prefetch=1,
        grid=(G,),
        in_specs=[
            pl.BlockSpec((tb, C), lambda g, t: (g, 0)),        # batch block of x
            pl.BlockSpec((C, E, C), lambda g, t: (0, 0, 0)),   # onehot_num (resident)
            pl.BlockSpec((C, E, C), lambda g, t: (0, 0, 0)),   # onehot_den (resident)
            pl.BlockSpec((C, E, 1), lambda g, t: (0, 0, 0)),   # weights    (resident)
        ],
        out_specs=pl.BlockSpec((1, 1, 1), lambda g, t: (g, 0, 0)),
    )

    cost = pl.CostEstimate(
        flops=4 * b_pad * C * E + 6 * b_pad * E,
        transcendentals=b_pad * E,
        bytes_accessed=(b_pad * C * 4          # x
                        + 2 * C * E * C * 2    # bf16 onehot tables (read once)
                        + C * E * 4            # weights
                        + b_pad * 4            # targets
                        + G * 4),              # partial sums
    )

    partials = pl.pallas_call(
        _hll_kernel,
        out_shape=jax.ShapeDtypeStruct((G, 1, 1), jnp.float32),
        grid_spec=grid_spec,
        compiler_params=pltpu.CompilerParams(
            dimension_semantics=("parallel",),
            # Raise further for real (ImageNet-scale) C on v5e/v6e (128 MiB
            # VMEM); keep bf16 tables / <= 64 MiB budget on v7x.
            vmem_limit_bytes=32 * 1024 * 1024),
        cost_estimate=cost,
    )(tgt, x, num_t, den_t, w3)

    # Sum the per-block partials and divide by the real batch size once.
    return jnp.sum(partials) / B


# -----------------------------------------------------------------------------
# Pure-JAX reference (mirrors the PyTorch forward exactly).
# -----------------------------------------------------------------------------
def _reference(inputs, target, onehot_num, onehot_den, weights):
    num = jnp.einsum('bc,bce->be', inputs, onehot_num[target])
    den = jnp.einsum('bc,bce->be', inputs, onehot_den[target])
    mask = num != 0
    val = jnp.where(
        mask,
        -jnp.log(jnp.where(mask, num, 1.0) / jnp.where(mask, den, 1.0)),
        0.0,
    )
    per = jnp.sum(jnp.flip(weights[target] * val, axis=1), axis=1)
    return jnp.mean(per)


if __name__ == "__main__":
    depth = 3
    C = 2 ** depth      # 8 classes
    B = 4               # batch

    onehot_num, onehot_den, weights = build_hierarchy_params(depth)

    key = jax.random.PRNGKey(0)
    k1, k2 = jax.random.split(key)
    logits = jax.random.normal(k1, (B, C), dtype=jnp.float32)
    probs = jax.nn.softmax(logits, axis=-1)     # inputs are probabilities
    target = jax.random.randint(k2, (B,), 0, C, dtype=jnp.int32)

    loss = hierarchical_ll_loss(probs, target, onehot_num, onehot_den, weights)
    loss = jax.block_until_ready(loss)

    ref = _reference(probs, target, onehot_num, onehot_den, weights)
    np.testing.assert_allclose(np.asarray(loss), np.asarray(ref),
                               rtol=1e-5, atol=1e-6)
    print("KERNEL_OK")
</pallas_src>

<mosaic_0001>
module attributes {stable_mosaic.version = 11 : i64} {
  func.func @_hll_kernel(%arg0: i32, %arg1: memref<8xi32, #tpu.memory_space<smem>>, %arg2: memref<8x8xf32, #tpu.memory_space<vmem>>, %arg3: memref<8x3x8xbf16, #tpu.memory_space<vmem>>, %arg4: memref<8x3x8xbf16, #tpu.memory_space<vmem>>, %arg5: memref<8x3x1xf32, #tpu.memory_space<vmem>>, %arg6: memref<1x1x1xf32, #tpu.memory_space<vmem>>) attributes {dimension_semantics = [#tpu.dimension_semantics<parallel>], iteration_bounds = array<i64: 1>, scalar_prefetch = 1 : i64, scratch_operands = 0 : i64, tpu.core_type = #tpu.core_type<tc>, window_params = [{transform_indices = @transform_0, window_bounds = array<i64: 8, 8>}, {pipeline_mode = #tpu.pipeline_mode<synchronous>, transform_indices = @transform_1, window_bounds = array<i64: 8, 3, 8>}, {pipeline_mode = #tpu.pipeline_mode<synchronous>, transform_indices = @transform_2, window_bounds = array<i64: 8, 3, 8>}, {pipeline_mode = #tpu.pipeline_mode<synchronous>, transform_indices = @transform_3, window_bounds = array<i64: 8, 3, 1>}, {transform_indices = @transform_4, window_bounds = array<i64: 1, 1, 1>}]} {
    %cst = arith.constant 0.000000e+00 : f32
    %0 = vector.broadcast %cst : f32 to vector<1x1xf32>
    %c0_i32 = arith.constant 0 : i32
    %c8_i32 = arith.constant 8 : i32
    %1 = arith.muli %arg0, %c8_i32 : i32
    %2 = arith.addi %1, %c0_i32 : i32
    %3 = arith.index_cast %2 : i32 to index
    %4 = memref.load %arg1[%3] : memref<8xi32, #tpu.memory_space<smem>>
    %5 = arith.index_cast %c0_i32 : i32 to index
    %c0 = arith.constant 0 : index
    %6 = vector.load %arg2[%5, %c0] : memref<8x8xf32, #tpu.memory_space<vmem>>, vector<1x8xf32>
    %7 = arith.index_cast %4 : i32 to index
    %c0_0 = arith.constant 0 : index
    %c0_1 = arith.constant 0 : index
    %8 = vector.load %arg3[%7, %c0_0, %c0_1] : memref<8x3x8xbf16, #tpu.memory_space<vmem>>, vector<1x3x8xbf16>
    %9 = vector.shape_cast %8 : vector<1x3x8xbf16> to vector<3x8xbf16>
    %10 = arith.extf %9 : vector<3x8xbf16> to vector<3x8xf32>
    %11 = arith.index_cast %4 : i32 to index
    %c0_2 = arith.constant 0 : index
    %c0_3 = arith.constant 0 : index
    %12 = vector.load %arg4[%11, %c0_2, %c0_3] : memref<8x3x8xbf16, #tpu.memory_space<vmem>>, vector<1x3x8xbf16>
    %13 = vector.shape_cast %12 : vector<1x3x8xbf16> to vector<3x8xbf16>
    %14 = arith.extf %13 : vector<3x8xbf16> to vector<3x8xf32>
    %15 = arith.index_cast %4 : i32 to index
    %c0_4 = arith.constant 0 : index
    %c0_5 = arith.constant 0 : index
    %16 = vector.load %arg5[%15, %c0_4, %c0_5] : memref<8x3x1xf32, #tpu.memory_space<vmem>>, vector<1x3x1xf32>
    %17 = vector.shape_cast %16 : vector<1x3x1xf32> to vector<3x1xf32>
    %18 = vector.broadcast %6 : vector<1x8xf32> to vector<3x8xf32>
    %19 = arith.mulf %18, %10 : vector<3x8xf32>
    %cst_6 = arith.constant dense<0.000000e+00> : vector<3xf32>
    %20 = vector.multi_reduction <add>, %19, %cst_6 [1] : vector<3x8xf32> to vector<3xf32>
    %21 = vector.shape_cast %20 : vector<3xf32> to vector<3x1xf32>
    %22 = vector.broadcast %6 : vector<1x8xf32> to vector<3x8xf32>
    %23 = arith.mulf %22, %14 : vector<3x8xf32>
    %cst_7 = arith.constant dense<0.000000e+00> : vector<3xf32>
    %24 = vector.multi_reduction <add>, %23, %cst_7 [1] : vector<3x8xf32> to vector<3xf32>
    %25 = vector.shape_cast %24 : vector<3xf32> to vector<3x1xf32>
    %cst_8 = arith.constant 0.000000e+00 : f32
    %26 = vector.broadcast %cst_8 : f32 to vector<3x1xf32>
    %27 = arith.cmpf one, %21, %26 : vector<3x1xf32>
    %cst_9 = arith.constant 1.000000e+00 : f32
    %28 = vector.broadcast %cst_9 : f32 to vector<3x1xf32>
    %29 = arith.select %27, %21, %28 : vector<3x1xi1>, vector<3x1xf32>
    %cst_10 = arith.constant 1.000000e+00 : f32
    %30 = vector.broadcast %cst_10 : f32 to vector<3x1xf32>
    %31 = arith.select %27, %25, %30 : vector<3x1xi1>, vector<3x1xf32>
    %32 = arith.divf %29, %31 : vector<3x1xf32>
    %33 = math.log %32 : vector<3x1xf32>
    %cst_11 = arith.constant 0.000000e+00 : f32
    %34 = vector.broadcast %cst_11 : f32 to vector<3x1xf32>
    %35 = arith.subf %34, %33 : vector<3x1xf32>
    %cst_12 = arith.constant 0.000000e+00 : f32
    %36 = vector.broadcast %cst_12 : f32 to vector<3x1xf32>
    %37 = arith.select %27, %35, %36 : vector<3x1xi1>, vector<3x1xf32>
    %38 = arith.mulf %17, %37 : vector<3x1xf32>
    %39 = vector.shape_cast %38 : vector<3x1xf32> to vector<1x3x1xf32>
    %cst_13 = arith.constant dense<0.000000e+00> : vector<1xf32>
    %40 = vector.multi_reduction <add>, %39, %cst_13 [1, 2] : vector<1x3x1xf32> to vector<1xf32>
    %41 = vector.shape_cast %40 : vector<1xf32> to vector<1x1x1xf32>
    %42 = vector.extract %41[0, 0, 0] : f32 from vector<1x1x1xf32>
    %43 = vector.broadcast %42 : f32 to vector<1x1xf32>
    %44 = arith.addf %0, %43 : vector<1x1xf32>
    %c1_i32 = arith.constant 1 : i32
    %c8_i32_14 = arith.constant 8 : i32
    %45 = arith.muli %arg0, %c8_i32_14 : i32
    %46 = arith.addi %45, %c1_i32 : i32
    %47 = arith.index_cast %46 : i32 to index
    %48 = memref.load %arg1[%47] : memref<8xi32, #tpu.memory_space<smem>>
    %49 = arith.index_cast %c1_i32 : i32 to index
    %c0_15 = arith.constant 0 : index
    %50 = vector.load %arg2[%49, %c0_15] : memref<8x8xf32, #tpu.memory_space<vmem>>, vector<1x8xf32>
    %51 = arith.index_cast %48 : i32 to index
    %c0_16 = arith.constant 0 : index
    %c0_17 = arith.constant 0 : index
    %52 = vector.load %arg3[%51, %c0_16, %c0_17] : memref<8x3x8xbf16, #tpu.memory_space<vmem>>, vector<1x3x8xbf16>
    %53 = vector.shape_cast %52 : vector<1x3x8xbf16> to vector<3x8xbf16>
    %54 = arith.extf %53 : vector<3x8xbf16> to vector<3x8xf32>
    %55 = arith.index_cast %48 : i32 to index
    %c0_18 = arith.constant 0 : index
    %c0_19 = arith.constant 0 : index
    %56 = vector.load %arg4[%55, %c0_18, %c0_19] : memref<8x3x8xbf16, #tpu.memory_space<vmem>>, vector<1x3x8xbf16>
    %57 = vector.shape_cast %56 : vector<1x3x8xbf16> to vector<3x8xbf16>
    %58 = arith.extf %57 : vector<3x8xbf16> to vector<3x8xf32>
    %59 = arith.index_cast %48 : i32 to index
    %c0_20 = arith.constant 0 : index
    %c0_21 = arith.constant 0 : index
    %60 = vector.load %arg5[%59, %c0_20, %c0_21] : memref<8x3x1xf32, #tpu.memory_space<vmem>>, vector<1x3x1xf32>
    %61 = vector.shape_cast %60 : vector<1x3x1xf32> to vector<3x1xf32>
    %62 = vector.broadcast %50 : vector<1x8xf32> to vector<3x8xf32>
    %63 = arith.mulf %62, %54 : vector<3x8xf32>
    %cst_22 = arith.constant dense<0.000000e+00> : vector<3xf32>
    %64 = vector.multi_reduction <add>, %63, %cst_22 [1] : vector<3x8xf32> to vector<3xf32>
    %65 = vector.shape_cast %64 : vector<3xf32> to vector<3x1xf32>
    %66 = vector.broadcast %50 : vector<1x8xf32> to vector<3x8xf32>
    %67 = arith.mulf %66, %58 : vector<3x8xf32>
    %cst_23 = arith.constant dense<0.000000e+00> : vector<3xf32>
    %68 = vector.multi_reduction <add>, %67, %cst_23 [1] : vector<3x8xf32> to vector<3xf32>
    %69 = vector.shape_cast %68 : vector<3xf32> to vector<3x1xf32>
    %cst_24 = arith.constant 0.000000e+00 : f32
    %70 = vector.broadcast %cst_24 : f32 to vector<3x1xf32>
    %71 = arith.cmpf one, %65, %70 : vector<3x1xf32>
    %cst_25 = arith.constant 1.000000e+00 : f32
    %72 = vector.broadcast %cst_25 : f32 to vector<3x1xf32>
    %73 = arith.select %71, %65, %72 : vector<3x1xi1>, vector<3x1xf32>
    %cst_26 = arith.constant 1.000000e+00 : f32
    %74 = vector.broadcast %cst_26 : f32 to vector<3x1xf32>
    %75 = arith.select %71, %69, %74 : vector<3x1xi1>, vector<3x1xf32>
    %76 = arith.divf %73, %75 : vector<3x1xf32>
    %77 = math.log %76 : vector<3x1xf32>
    %cst_27 = arith.constant 0.000000e+00 : f32
    %78 = vector.broadcast %cst_27 : f32 to vector<3x1xf32>
    %79 = arith.subf %78, %77 : vector<3x1xf32>
    %cst_28 = arith.constant 0.000000e+00 : f32
    %80 = vector.broadcast %cst_28 : f32 to vector<3x1xf32>
    %81 = arith.select %71, %79, %80 : vector<3x1xi1>, vector<3x1xf32>
    %82 = arith.mulf %61, %81 : vector<3x1xf32>
    %83 = vector.shape_cast %82 : vector<3x1xf32> to vector<1x3x1xf32>
    %cst_29 = arith.constant dense<0.000000e+00> : vector<1xf32>
    %84 = vector.multi_reduction <add>, %83, %cst_29 [1, 2] : vector<1x3x1xf32> to vector<1xf32>
    %85 = vector.shape_cast %84 : vector<1xf32> to vector<1x1x1xf32>
    %86 = vector.extract %85[0, 0, 0] : f32 from vector<1x1x1xf32>
    %87 = vector.broadcast %86 : f32 to vector<1x1xf32>
    %88 = arith.addf %44, %87 : vector<1x1xf32>
    %c2_i32 = arith.constant 2 : i32
    %c8_i32_30 = arith.constant 8 : i32
    %89 = arith.muli %arg0, %c8_i32_30 : i32
    %90 = arith.addi %89, %c2_i32 : i32
    %91 = arith.index_cast %90 : i32 to index
    %92 = memref.load %arg1[%91] : memref<8xi32, #tpu.memory_space<smem>>
    %93 = arith.index_cast %c2_i32 : i32 to index
    %c0_31 = arith.constant 0 : index
    %94 = vector.load %arg2[%93, %c0_31] : memref<8x8xf32, #tpu.memory_space<vmem>>, vector<1x8xf32>
    %95 = arith.index_cast %92 : i32 to index
    %c0_32 = arith.constant 0 : index
    %c0_33 = arith.constant 0 : index
    %96 = vector.load %arg3[%95, %c0_32, %c0_33] : memref<8x3x8xbf16, #tpu.memory_space<vmem>>, vector<1x3x8xbf16>
    %97 = vector.shape_cast %96 : vector<1x3x8xbf16> to vector<3x8xbf16>
    %98 = arith.extf %97 : vector<3x8xbf16> to vector<3x8xf32>
    %99 = arith.index_cast %92 : i32 to index
    %c0_34 = arith.constant 0 : index
    %c0_35 = arith.constant 0 : index
    %100 = vector.load %arg4[%99, %c0_34, %c0_35] : memref<8x3x8xbf16, #tpu.memory_space<vmem>>, vector<1x3x8xbf16>
    %101 = vector.shape_cast %100 : vector<1x3x8xbf16> to vector<3x8xbf16>
    %102 = arith.extf %101 : vector<3x8xbf16> to vector<3x8xf32>
    %103 = arith.index_cast %92 : i32 to index
    %c0_36 = arith.constant 0 : index
    %c0_37 = arith.constant 0 : index
    %104 = vector.load %arg5[%103, %c0_36, %c0_37] : memref<8x3x1xf32, #tpu.memory_space<vmem>>, vector<1x3x1xf32>
    %105 = vector.shape_cast %104 : vector<1x3x1xf32> to vector<3x1xf32>
    %106 = vector.broadcast %94 : vector<1x8xf32> to vector<3x8xf32>
    %107 = arith.mulf %106, %98 : vector<3x8xf32>
    %cst_38 = arith.constant dense<0.000000e+00> : vector<3xf32>
    %108 = vector.multi_reduction <add>, %107, %cst_38 [1] : vector<3x8xf32> to vector<3xf32>
    %109 = vector.shape_cast %108 : vector<3xf32> to vector<3x1xf32>
    %110 = vector.broadcast %94 : vector<1x8xf32> to vector<3x8xf32>
    %111 = arith.mulf %110, %102 : vector<3x8xf32>
    %cst_39 = arith.constant dense<0.000000e+00> : vector<3xf32>
    %112 = vector.multi_reduction <add>, %111, %cst_39 [1] : vector<3x8xf32> to vector<3xf32>
    %113 = vector.shape_cast %112 : vector<3xf32> to vector<3x1xf32>
    %cst_40 = arith.constant 0.000000e+00 : f32
    %114 = vector.broadcast %cst_40 : f32 to vector<3x1xf32>
    %115 = arith.cmpf one, %109, %114 : vector<3x1xf32>
    %cst_41 = arith.constant 1.000000e+00 : f32
    %116 = vector.broadcast %cst_41 : f32 to vector<3x1xf32>
    %117 = arith.select %115, %109, %116 : vector<3x1xi1>, vector<3x1xf32>
    %cst_42 = arith.constant 1.000000e+00 : f32
    %118 = vector.broadcast %cst_42 : f32 to vector<3x1xf32>
    %119 = arith.select %115, %113, %118 : vector<3x1xi1>, vector<3x1xf32>
    %120 = arith.divf %117, %119 : vector<3x1xf32>
    %121 = math.log %120 : vector<3x1xf32>
    %cst_43 = arith.constant 0.000000e+00 : f32
    %122 = vector.broadcast %cst_43 : f32 to vector<3x1xf32>
    %123 = arith.subf %122, %121 : vector<3x1xf32>
    %cst_44 = arith.constant 0.000000e+00 : f32
    %124 = vector.broadcast %cst_44 : f32 to vector<3x1xf32>
    %125 = arith.select %115, %123, %124 : vector<3x1xi1>, vector<3x1xf32>
    %126 = arith.mulf %105, %125 : vector<3x1xf32>
    %127 = vector.shape_cast %126 : vector<3x1xf32> to vector<1x3x1xf32>
    %cst_45 = arith.constant dense<0.000000e+00> : vector<1xf32>
    %128 = vector.multi_reduction <add>, %127, %cst_45 [1, 2] : vector<1x3x1xf32> to vector<1xf32>
    %129 = vector.shape_cast %128 : vector<1xf32> to vector<1x1x1xf32>
    %130 = vector.extract %129[0, 0, 0] : f32 from vector<1x1x1xf32>
    %131 = vector.broadcast %130 : f32 to vector<1x1xf32>
    %132 = arith.addf %88, %131 : vector<1x1xf32>
    %c3_i32 = arith.constant 3 : i32
    %c8_i32_46 = arith.constant 8 : i32
    %133 = arith.muli %arg0, %c8_i32_46 : i32
    %134 = arith.addi %133, %c3_i32 : i32
    %135 = arith.index_cast %134 : i32 to index
    %136 = memref.load %arg1[%135] : memref<8xi32, #tpu.memory_space<smem>>
    %137 = arith.index_cast %c3_i32 : i32 to index
    %c0_47 = arith.constant 0 : index
    %138 = vector.load %arg2[%137, %c0_47] : memref<8x8xf32, #tpu.memory_space<vmem>>, vector<1x8xf32>
    %139 = arith.index_cast %136 : i32 to index
    %c0_48 = arith.constant 0 : index
    %c0_49 = arith.constant 0 : index
    %140 = vector.load %arg3[%139, %c0_48, %c0_49] : memref<8x3x8xbf16, #tpu.memory_space<vmem>>, vector<1x3x8xbf16>
    %141 = vector.shape_cast %140 : vector<1x3x8xbf16> to vector<3x8xbf16>
    %142 = arith.extf %141 : vector<3x8xbf16> to vector<3x8xf32>
    %143 = arith.index_cast %136 : i32 to index
    %c0_50 = arith.constant 0 : index
    %c0_51 = arith.constant 0 : index
    %144 = vector.load %arg4[%143, %c0_50, %c0_51] : memref<8x3x8xbf16, #tpu.memory_space<vmem>>, vector<1x3x8xbf16>
    %145 = vector.shape_cast %144 : vector<1x3x8xbf16> to vector<3x8xbf16>
    %146 = arith.extf %145 : vector<3x8xbf16> to vector<3x8xf32>
    %147 = arith.index_cast %136 : i32 to index
    %c0_52 = arith.constant 0 : index
    %c0_53 = arith.constant 0 : index
    %148 = vector.load %arg5[%147, %c0_52, %c0_53] : memref<8x3x1xf32, #tpu.memory_space<vmem>>, vector<1x3x1xf32>
    %149 = vector.shape_cast %148 : vector<1x3x1xf32> to vector<3x1xf32>
    %150 = vector.broadcast %138 : vector<1x8xf32> to vector<3x8xf32>
    %151 = arith.mulf %150, %142 : vector<3x8xf32>
    %cst_54 = arith.constant dense<0.000000e+00> : vector<3xf32>
    %152 = vector.multi_reduction <add>, %151, %cst_54 [1] : vector<3x8xf32> to vector<3xf32>
    %153 = vector.shape_cast %152 : vector<3xf32> to vector<3x1xf32>
    %154 = vector.broadcast %138 : vector<1x8xf32> to vector<3x8xf32>
    %155 = arith.mulf %154, %146 : vector<3x8xf32>
    %cst_55 = arith.constant dense<0.000000e+00> : vector<3xf32>
    %156 = vector.multi_reduction <add>, %155, %cst_55 [1] : vector<3x8xf32> to vector<3xf32>
    %157 = vector.shape_cast %156 : vector<3xf32> to vector<3x1xf32>
    %cst_56 = arith.constant 0.000000e+00 : f32
    %158 = vector.broadcast %cst_56 : f32 to vector<3x1xf32>
    %159 = arith.cmpf one, %153, %158 : vector<3x1xf32>
    %cst_57 = arith.constant 1.000000e+00 : f32
    %160 = vector.broadcast %cst_57 : f32 to vector<3x1xf32>
    %161 = arith.select %159, %153, %160 : vector<3x1xi1>, vector<3x1xf32>
    %cst_58 = arith.constant 1.000000e+00 : f32
    %162 = vector.broadcast %cst_58 : f32 to vector<3x1xf32>
    %163 = arith.select %159, %157, %162 : vector<3x1xi1>, vector<3x1xf32>
    %164 = arith.divf %161, %163 : vector<3x1xf32>
    %165 = math.log %164 : vector<3x1xf32>
    %cst_59 = arith.constant 0.000000e+00 : f32
    %166 = vector.broadcast %cst_59 : f32 to vector<3x1xf32>
    %167 = arith.subf %166, %165 : vector<3x1xf32>
    %cst_60 = arith.constant 0.000000e+00 : f32
    %168 = vector.broadcast %cst_60 : f32 to vector<3x1xf32>
    %169 = arith.select %159, %167, %168 : vector<3x1xi1>, vector<3x1xf32>
    %170 = arith.mulf %149, %169 : vector<3x1xf32>
    %171 = vector.shape_cast %170 : vector<3x1xf32> to vector<1x3x1xf32>
    %cst_61 = arith.constant dense<0.000000e+00> : vector<1xf32>
    %172 = vector.multi_reduction <add>, %171, %cst_61 [1, 2] : vector<1x3x1xf32> to vector<1xf32>
    %173 = vector.shape_cast %172 : vector<1xf32> to vector<1x1x1xf32>
    %174 = vector.extract %173[0, 0, 0] : f32 from vector<1x1x1xf32>
    %175 = vector.broadcast %174 : f32 to vector<1x1xf32>
    %176 = arith.addf %132, %175 : vector<1x1xf32>
    %c4_i32 = arith.constant 4 : i32
    %c8_i32_62 = arith.constant 8 : i32
    %177 = arith.muli %arg0, %c8_i32_62 : i32
    %178 = arith.addi %177, %c4_i32 : i32
    %179 = arith.index_cast %178 : i32 to index
    %180 = memref.load %arg1[%179] : memref<8xi32, #tpu.memory_space<smem>>
    %181 = arith.index_cast %c4_i32 : i32 to index
    %c0_63 = arith.constant 0 : index
    %182 = vector.load %arg2[%181, %c0_63] : memref<8x8xf32, #tpu.memory_space<vmem>>, vector<1x8xf32>
    %183 = arith.index_cast %180 : i32 to index
    %c0_64 = arith.constant 0 : index
    %c0_65 = arith.constant 0 : index
    %184 = vector.load %arg3[%183, %c0_64, %c0_65] : memref<8x3x8xbf16, #tpu.memory_space<vmem>>, vector<1x3x8xbf16>
    %185 = vector.shape_cast %184 : vector<1x3x8xbf16> to vector<3x8xbf16>
    %186 = arith.extf %185 : vector<3x8xbf16> to vector<3x8xf32>
    %187 = arith.index_cast %180 : i32 to index
    %c0_66 = arith.constant 0 : index
    %c0_67 = arith.constant 0 : index
    %188 = vector.load %arg4[%187, %c0_66, %c0_67] : memref<8x3x8xbf16, #tpu.memory_space<vmem>>, vector<1x3x8xbf16>
    %189 = vector.shape_cast %188 : vector<1x3x8xbf16> to vector<3x8xbf16>
    %190 = arith.extf %189 : vector<3x8xbf16> to vector<3x8xf32>
    %191 = arith.index_cast %180 : i32 to index
    %c0_68 = arith.constant 0 : index
    %c0_69 = arith.constant 0 : index
    %192 = vector.load %arg5[%191, %c0_68, %c0_69] : memref<8x3x1xf32, #tpu.memory_space<vmem>>, vector<1x3x1xf32>
    %193 = vector.shape_cast %192 : vector<1x3x1xf32> to vector<3x1xf32>
    %194 = vector.broadcast %182 : vector<1x8xf32> to vector<3x8xf32>
    %195 = arith.mulf %194, %186 : vector<3x8xf32>
    %cst_70 = arith.constant dense<0.000000e+00> : vector<3xf32>
    %196 = vector.multi_reduction <add>, %195, %cst_70 [1] : vector<3x8xf32> to vector<3xf32>
    %197 = vector.shape_cast %196 : vector<3xf32> to vector<3x1xf32>
    %198 = vector.broadcast %182 : vector<1x8xf32> to vector<3x8xf32>
    %199 = arith.mulf %198, %190 : vector<3x8xf32>
    %cst_71 = arith.constant dense<0.000000e+00> : vector<3xf32>
    %200 = vector.multi_reduction <add>, %199, %cst_71 [1] : vector<3x8xf32> to vector<3xf32>
    %201 = vector.shape_cast %200 : vector<3xf32> to vector<3x1xf32>
    %cst_72 = arith.constant 0.000000e+00 : f32
    %202 = vector.broadcast %cst_72 : f32 to vector<3x1xf32>
    %203 = arith.cmpf one, %197, %202 : vector<3x1xf32>
    %cst_73 = arith.constant 1.000000e+00 : f32
    %204 = vector.broadcast %cst_73 : f32 to vector<3x1xf32>
    %205 = arith.select %203, %197, %204 : vector<3x1xi1>, vector<3x1xf32>
    %cst_74 = arith.constant 1.000000e+00 : f32
    %206 = vector.broadcast %cst_74 : f32 to vector<3x1xf32>
    %207 = arith.select %203, %201, %206 : vector<3x1xi1>, vector<3x1xf32>
    %208 = arith.divf %205, %207 : vector<3x1xf32>
    %209 = math.log %208 : vector<3x1xf32>
    %cst_75 = arith.constant 0.000000e+00 : f32
    %210 = vector.broadcast %cst_75 : f32 to vector<3x1xf32>
    %211 = arith.subf %210, %209 : vector<3x1xf32>
    %cst_76 = arith.constant 0.000000e+00 : f32
    %212 = vector.broadcast %cst_76 : f32 to vector<3x1xf32>
    %213 = arith.select %203, %211, %212 : vector<3x1xi1>, vector<3x1xf32>
    %214 = arith.mulf %193, %213 : vector<3x1xf32>
    %215 = vector.shape_cast %214 : vector<3x1xf32> to vector<1x3x1xf32>
    %cst_77 = arith.constant dense<0.000000e+00> : vector<1xf32>
    %216 = vector.multi_reduction <add>, %215, %cst_77 [1, 2] : vector<1x3x1xf32> to vector<1xf32>
    %217 = vector.shape_cast %216 : vector<1xf32> to vector<1x1x1xf32>
    %218 = vector.extract %217[0, 0, 0] : f32 from vector<1x1x1xf32>
    %219 = vector.broadcast %218 : f32 to vector<1x1xf32>
    %220 = arith.addf %176, %219 : vector<1x1xf32>
    %c5_i32 = arith.constant 5 : i32
    %c8_i32_78 = arith.constant 8 : i32
    %221 = arith.muli %arg0, %c8_i32_78 : i32
    %222 = arith.addi %221, %c5_i32 : i32
    %223 = arith.index_cast %222 : i32 to index
    %224 = memref.load %arg1[%223] : memref<8xi32, #tpu.memory_space<smem>>
    %225 = arith.index_cast %c5_i32 : i32 to index
    %c0_79 = arith.constant 0 : index
    %226 = vector.load %arg2[%225, %c0_79] : memref<8x8xf32, #tpu.memory_space<vmem>>, vector<1x8xf32>
    %227 = arith.index_cast %224 : i32 to index
    %c0_80 = arith.constant 0 : index
    %c0_81 = arith.constant 0 : index
    %228 = vector.load %arg3[%227, %c0_80, %c0_81] : memref<8x3x8xbf16, #tpu.memory_space<vmem>>, vector<1x3x8xbf16>
    %229 = vector.shape_cast %228 : vector<1x3x8xbf16> to vector<3x8xbf16>
    %230 = arith.extf %229 : vector<3x8xbf16> to vector<3x8xf32>
    %231 = arith.index_cast %224 : i32 to index
    %c0_82 = arith.constant 0 : index
    %c0_83 = arith.constant 0 : index
    %232 = vector.load %arg4[%231, %c0_82, %c0_83] : memref<8x3x8xbf16, #tpu.memory_space<vmem>>, vector<1x3x8xbf16>
    %233 = vector.shape_cast %232 : vector<1x3x8xbf16> to vector<3x8xbf16>
    %234 = arith.extf %233 : vector<3x8xbf16> to vector<3x8xf32>
    %235 = arith.index_cast %224 : i32 to index
    %c0_84 = arith.constant 0 : index
    %c0_85 = arith.constant 0 : index
    %236 = vector.load %arg5[%235, %c0_84, %c0_85] : memref<8x3x1xf32, #tpu.memory_space<vmem>>, vector<1x3x1xf32>
    %237 = vector.shape_cast %236 : vector<1x3x1xf32> to vector<3x1xf32>
    %238 = vector.broadcast %226 : vector<1x8xf32> to vector<3x8xf32>
    %239 = arith.mulf %238, %230 : vector<3x8xf32>
    %cst_86 = arith.constant dense<0.000000e+00> : vector<3xf32>
    %240 = vector.multi_reduction <add>, %239, %cst_86 [1] : vector<3x8xf32> to vector<3xf32>
    %241 = vector.shape_cast %240 : vector<3xf32> to vector<3x1xf32>
    %242 = vector.broadcast %226 : vector<1x8xf32> to vector<3x8xf32>
    %243 = arith.mulf %242, %234 : vector<3x8xf32>
    %cst_87 = arith.constant dense<0.000000e+00> : vector<3xf32>
    %244 = vector.multi_reduction <add>, %243, %cst_87 [1] : vector<3x8xf32> to vector<3xf32>
    %245 = vector.shape_cast %244 : vector<3xf32> to vector<3x1xf32>
    %cst_88 = arith.constant 0.000000e+00 : f32
    %246 = vector.broadcast %cst_88 : f32 to vector<3x1xf32>
    %247 = arith.cmpf one, %241, %246 : vector<3x1xf32>
    %cst_89 = arith.constant 1.000000e+00 : f32
    %248 = vector.broadcast %cst_89 : f32 to vector<3x1xf32>
    %249 = arith.select %247, %241, %248 : vector<3x1xi1>, vector<3x1xf32>
    %cst_90 = arith.constant 1.000000e+00 : f32
    %250 = vector.broadcast %cst_90 : f32 to vector<3x1xf32>
    %251 = arith.select %247, %245, %250 : vector<3x1xi1>, vector<3x1xf32>
    %252 = arith.divf %249, %251 : vector<3x1xf32>
    %253 = math.log %252 : vector<3x1xf32>
    %cst_91 = arith.constant 0.000000e+00 : f32
    %254 = vector.broadcast %cst_91 : f32 to vector<3x1xf32>
    %255 = arith.subf %254, %253 : vector<3x1xf32>
    %cst_92 = arith.constant 0.000000e+00 : f32
    %256 = vector.broadcast %cst_92 : f32 to vector<3x1xf32>
    %257 = arith.select %247, %255, %256 : vector<3x1xi1>, vector<3x1xf32>
    %258 = arith.mulf %237, %257 : vector<3x1xf32>
    %259 = vector.shape_cast %258 : vector<3x1xf32> to vector<1x3x1xf32>
    %cst_93 = arith.constant dense<0.000000e+00> : vector<1xf32>
    %260 = vector.multi_reduction <add>, %259, %cst_93 [1, 2] : vector<1x3x1xf32> to vector<1xf32>
    %261 = vector.shape_cast %260 : vector<1xf32> to vector<1x1x1xf32>
    %262 = vector.extract %261[0, 0, 0] : f32 from vector<1x1x1xf32>
    %263 = vector.broadcast %262 : f32 to vector<1x1xf32>
    %264 = arith.addf %220, %263 : vector<1x1xf32>
    %c6_i32 = arith.constant 6 : i32
    %c8_i32_94 = arith.constant 8 : i32
    %265 = arith.muli %arg0, %c8_i32_94 : i32
    %266 = arith.addi %265, %c6_i32 : i32
    %267 = arith.index_cast %266 : i32 to index
    %268 = memref.load %arg1[%267] : memref<8xi32, #tpu.memory_space<smem>>
    %269 = arith.index_cast %c6_i32 : i32 to index
    %c0_95 = arith.constant 0 : index
    %270 = vector.load %arg2[%269, %c0_95] : memref<8x8xf32, #tpu.memory_space<vmem>>, vector<1x8xf32>
    %271 = arith.index_cast %268 : i32 to index
    %c0_96 = arith.constant 0 : index
    %c0_97 = arith.constant 0 : index
    %272 = vector.load %arg3[%271, %c0_96, %c0_97] : memref<8x3x8xbf16, #tpu.memory_space<vmem>>, vector<1x3x8xbf16>
    %273 = vector.shape_cast %272 : vector<1x3x8xbf16> to vector<3x8xbf16>
    %274 = arith.extf %273 : vector<3x8xbf16> to vector<3x8xf32>
    %275 = arith.index_cast %268 : i32 to index
    %c0_98 = arith.constant 0 : index
    %c0_99 = arith.constant 0 : index
    %276 = vector.load %arg4[%275, %c0_98, %c0_99] : memref<8x3x8xbf16, #tpu.memory_space<vmem>>, vector<1x3x8xbf16>
    %277 = vector.shape_cast %276 : vector<1x3x8xbf16> to vector<3x8xbf16>
    %278 = arith.extf %277 : vector<3x8xbf16> to vector<3x8xf32>
    %279 = arith.index_cast %268 : i32 to index
    %c0_100 = arith.constant 0 : index
    %c0_101 = arith.constant 0 : index
    %280 = vector.load %arg5[%279, %c0_100, %c0_101] : memref<8x3x1xf32, #tpu.memory_space<vmem>>, vector<1x3x1xf32>
    %281 = vector.shape_cast %280 : vector<1x3x1xf32> to vector<3x1xf32>
    %282 = vector.broadcast %270 : vector<1x8xf32> to vector<3x8xf32>
    %283 = arith.mulf %282, %274 : vector<3x8xf32>
    %cst_102 = arith.constant dense<0.000000e+00> : vector<3xf32>
    %284 = vector.multi_reduction <add>, %283, %cst_102 [1] : vector<3x8xf32> to vector<3xf32>
    %285 = vector.shape_cast %284 : vector<3xf32> to vector<3x1xf32>
    %286 = vector.broadcast %270 : vector<1x8xf32> to vector<3x8xf32>
    %287 = arith.mulf %286, %278 : vector<3x8xf32>
    %cst_103 = arith.constant dense<0.000000e+00> : vector<3xf32>
    %288 = vector.multi_reduction <add>, %287, %cst_103 [1] : vector<3x8xf32> to vector<3xf32>
    %289 = vector.shape_cast %288 : vector<3xf32> to vector<3x1xf32>
    %cst_104 = arith.constant 0.000000e+00 : f32
    %290 = vector.broadcast %cst_104 : f32 to vector<3x1xf32>
    %291 = arith.cmpf one, %285, %290 : vector<3x1xf32>
    %cst_105 = arith.constant 1.000000e+00 : f32
    %292 = vector.broadcast %cst_105 : f32 to vector<3x1xf32>
    %293 = arith.select %291, %285, %292 : vector<3x1xi1>, vector<3x1xf32>
    %cst_106 = arith.constant 1.000000e+00 : f32
    %294 = vector.broadcast %cst_106 : f32 to vector<3x1xf32>
    %295 = arith.select %291, %289, %294 : vector<3x1xi1>, vector<3x1xf32>
    %296 = arith.divf %293, %295 : vector<3x1xf32>
    %297 = math.log %296 : vector<3x1xf32>
    %cst_107 = arith.constant 0.000000e+00 : f32
    %298 = vector.broadcast %cst_107 : f32 to vector<3x1xf32>
    %299 = arith.subf %298, %297 : vector<3x1xf32>
    %cst_108 = arith.constant 0.000000e+00 : f32
    %300 = vector.broadcast %cst_108 : f32 to vector<3x1xf32>
    %301 = arith.select %291, %299, %300 : vector<3x1xi1>, vector<3x1xf32>
    %302 = arith.mulf %281, %301 : vector<3x1xf32>
    %303 = vector.shape_cast %302 : vector<3x1xf32> to vector<1x3x1xf32>
    %cst_109 = arith.constant dense<0.000000e+00> : vector<1xf32>
    %304 = vector.multi_reduction <add>, %303, %cst_109 [1, 2] : vector<1x3x1xf32> to vector<1xf32>
    %305 = vector.shape_cast %304 : vector<1xf32> to vector<1x1x1xf32>
    %306 = vector.extract %305[0, 0, 0] : f32 from vector<1x1x1xf32>
    %307 = vector.broadcast %306 : f32 to vector<1x1xf32>
    %308 = arith.addf %264, %307 : vector<1x1xf32>
    %c7_i32 = arith.constant 7 : i32
    %c8_i32_110 = arith.constant 8 : i32
    %309 = arith.muli %arg0, %c8_i32_110 : i32
    %310 = arith.addi %309, %c7_i32 : i32
    %311 = arith.index_cast %310 : i32 to index
    %312 = memref.load %arg1[%311] : memref<8xi32, #tpu.memory_space<smem>>
    %313 = arith.index_cast %c7_i32 : i32 to index
    %c0_111 = arith.constant 0 : index
    %314 = vector.load %arg2[%313, %c0_111] : memref<8x8xf32, #tpu.memory_space<vmem>>, vector<1x8xf32>
    %315 = arith.index_cast %312 : i32 to index
    %c0_112 = arith.constant 0 : index
    %c0_113 = arith.constant 0 : index
    %316 = vector.load %arg3[%315, %c0_112, %c0_113] : memref<8x3x8xbf16, #tpu.memory_space<vmem>>, vector<1x3x8xbf16>
    %317 = vector.shape_cast %316 : vector<1x3x8xbf16> to vector<3x8xbf16>
    %318 = arith.extf %317 : vector<3x8xbf16> to vector<3x8xf32>
    %319 = arith.index_cast %312 : i32 to index
    %c0_114 = arith.constant 0 : index
    %c0_115 = arith.constant 0 : index
    %320 = vector.load %arg4[%319, %c0_114, %c0_115] : memref<8x3x8xbf16, #tpu.memory_space<vmem>>, vector<1x3x8xbf16>
    %321 = vector.shape_cast %320 : vector<1x3x8xbf16> to vector<3x8xbf16>
    %322 = arith.extf %321 : vector<3x8xbf16> to vector<3x8xf32>
    %323 = arith.index_cast %312 : i32 to index
    %c0_116 = arith.constant 0 : index
    %c0_117 = arith.constant 0 : index
    %324 = vector.load %arg5[%323, %c0_116, %c0_117] : memref<8x3x1xf32, #tpu.memory_space<vmem>>, vector<1x3x1xf32>
    %325 = vector.shape_cast %324 : vector<1x3x1xf32> to vector<3x1xf32>
    %326 = vector.broadcast %314 : vector<1x8xf32> to vector<3x8xf32>
    %327 = arith.mulf %326, %318 : vector<3x8xf32>
    %cst_118 = arith.constant dense<0.000000e+00> : vector<3xf32>
    %328 = vector.multi_reduction <add>, %327, %cst_118 [1] : vector<3x8xf32> to vector<3xf32>
    %329 = vector.shape_cast %328 : vector<3xf32> to vector<3x1xf32>
    %330 = vector.broadcast %314 : vector<1x8xf32> to vector<3x8xf32>
    %331 = arith.mulf %330, %322 : vector<3x8xf32>
    %cst_119 = arith.constant dense<0.000000e+00> : vector<3xf32>
    %332 = vector.multi_reduction <add>, %331, %cst_119 [1] : vector<3x8xf32> to vector<3xf32>
    %333 = vector.shape_cast %332 : vector<3xf32> to vector<3x1xf32>
    %cst_120 = arith.constant 0.000000e+00 : f32
    %334 = vector.broadcast %cst_120 : f32 to vector<3x1xf32>
    %335 = arith.cmpf one, %329, %334 : vector<3x1xf32>
    %cst_121 = arith.constant 1.000000e+00 : f32
    %336 = vector.broadcast %cst_121 : f32 to vector<3x1xf32>
    %337 = arith.select %335, %329, %336 : vector<3x1xi1>, vector<3x1xf32>
    %cst_122 = arith.constant 1.000000e+00 : f32
    %338 = vector.broadcast %cst_122 : f32 to vector<3x1xf32>
    %339 = arith.select %335, %333, %338 : vector<3x1xi1>, vector<3x1xf32>
    %340 = arith.divf %337, %339 : vector<3x1xf32>
    %341 = math.log %340 : vector<3x1xf32>
    %cst_123 = arith.constant 0.000000e+00 : f32
    %342 = vector.broadcast %cst_123 : f32 to vector<3x1xf32>
    %343 = arith.subf %342, %341 : vector<3x1xf32>
    %cst_124 = arith.constant 0.000000e+00 : f32
    %344 = vector.broadcast %cst_124 : f32 to vector<3x1xf32>
    %345 = arith.select %335, %343, %344 : vector<3x1xi1>, vector<3x1xf32>
    %346 = arith.mulf %325, %345 : vector<3x1xf32>
    %347 = vector.shape_cast %346 : vector<3x1xf32> to vector<1x3x1xf32>
    %cst_125 = arith.constant dense<0.000000e+00> : vector<1xf32>
    %348 = vector.multi_reduction <add>, %347, %cst_125 [1, 2] : vector<1x3x1xf32> to vector<1xf32>
    %349 = vector.shape_cast %348 : vector<1xf32> to vector<1x1x1xf32>
    %350 = vector.extract %349[0, 0, 0] : f32 from vector<1x1x1xf32>
    %351 = vector.broadcast %350 : f32 to vector<1x1xf32>
    %352 = arith.addf %308, %351 : vector<1x1xf32>
    %c8_i32_126 = arith.constant 8 : i32
    %c0_127 = arith.constant 0 : index
    %c0_128 = arith.constant 0 : index
    %c0_129 = arith.constant 0 : index
    %353 = vector.load %arg6[%c0_127, %c0_128, %c0_129] : memref<1x1x1xf32, #tpu.memory_space<vmem>>, vector<1x1x1xf32>
    %354 = vector.shape_cast %353 : vector<1x1x1xf32> to vector<1x1xf32>
    %355 = vector.shape_cast %352 : vector<1x1xf32> to vector<1x1x1xf32>
    tpu.vector_store %arg6[%c0_127, %c0_128, %c0_129], %355 {strides = array<i32>} : memref<1x1x1xf32, #tpu.memory_space<vmem>>, vector<1x1x1xf32>,
    return
  }
  func.func @transform_0(%arg0: i32, %arg1: memref<8xi32, #tpu.memory_space<smem>>) -> (i32, i32) {
    %c0_i32 = arith.constant 0 : i32
    %c0_i32_0 = arith.constant 0 : i32
    return %arg0, %c0_i32 : i32, i32
  }
  func.func @transform_1(%arg0: i32, %arg1: memref<8xi32, #tpu.memory_space<smem>>) -> (i32, i32, i32) {
    %c0_i32 = arith.constant 0 : i32
    %c0_i32_0 = arith.constant 0 : i32
    %c0_i32_1 = arith.constant 0 : i32
    %c0_i32_2 = arith.constant 0 : i32
    return %c0_i32, %c0_i32_0, %c0_i32_1 : i32, i32, i32
  }
  func.func @transform_2(%arg0: i32, %arg1: memref<8xi32, #tpu.memory_space<smem>>) -> (i32, i32, i32) {
    %c0_i32 = arith.constant 0 : i32
    %c0_i32_0 = arith.constant 0 : i32
    %c0_i32_1 = arith.constant 0 : i32
    %c0_i32_2 = arith.constant 0 : i32
    return %c0_i32, %c0_i32_0, %c0_i32_1 : i32, i32, i32
  }
  func.func @transform_3(%arg0: i32, %arg1: memref<8xi32, #tpu.memory_space<smem>>) -> (i32, i32, i32) {
    %c0_i32 = arith.constant 0 : i32
    %c0_i32_0 = arith.constant 0 : i32
    %c0_i32_1 = arith.constant 0 : i32
    %c0_i32_2 = arith.constant 0 : i32
    return %c0_i32, %c0_i32_0, %c0_i32_1 : i32, i32, i32
  }
  func.func @transform_4(%arg0: i32, %arg1: memref<8xi32, #tpu.memory_space<smem>>) -> (i32, i32, i32) {
    %c0_i32 = arith.constant 0 : i32
    %c0_i32_0 = arith.constant 0 : i32
    %c0_i32_1 = arith.constant 0 : i32
    return %arg0, %c0_i32, %c0_i32_0 : i32, i32, i32
  }
}

</mosaic_0001>

<bundles_post_ra>
// kernel: tpu_custom_call.1
= control target key start
LH: loop header
LB: loop body
LE: loop exit
PB: predicated region body
PF: predicated region fallthrough
CT: control target
= control target key end

     0   :  { %s688_s21 = smov [#allocation3]   ;;  %s1056_s0 = inlined_call_operand.vmem [shape: s32[8], index: 0, kind: input, shape index: {}]   ;;  %s1057_s1 = inlined_call_operand.vmem [shape: f32[8,8], index: 1, kind: input, shape index: {}]   ;;  %s1058_s2 = inlined_call_operand.vmem [shape: bf16[8,3,8], index: 2, kind: input, shape index: {}]   ;;  %s1059_s3 = inlined_call_operand.vmem [shape: bf16[8,3,8], index: 3, kind: input, shape index: {}]   ;;  %s1060_s4 = inlined_call_operand.vmem [shape: f32[8,3,1], index: 4, kind: input, shape index: {}]   ;;  %s1061_s5 = inlined_call_operand.hbm [shape: f32[1,1,1], index: 5, kind: output, shape index: {}]  }
   0x1   :  { %s11_s20 = sshll.u32 %s1056_s0, 4  ;;  %s12_s20 = int_to_ptr.vmem [resolvable:$true] %s11_s20 }
   0x2   :  { %14 = dma.vmem_to_smem %s12_s20, 16, %s688_s21, [#allocation2] }
   0x3   :  { %684 = dma.done.wait [#allocation2], 16 }
   0x4   :  { %685 = vsyncadd [#allocation2], 4294967280 }
   0x5   :  { %17 = sfence }
   0x6   :  { %s723_s22 = sld [smem:[#allocation3 + $0x2]]  ;;  %v608_v0 = vld [vmem:[%s1057_s1 + $0x2] ss:$0 sm:$0xff]  ;;  %v609_v1 = vld [vmem:[%s1057_s1] ss:$0 sm:$0xff] }
   0x7   :  { %s725_s23 = sld [smem:[#allocation3]] }
   0x8   :  { %s727_s24 = sld [smem:[#allocation3 + $0x1]] }
   0x9   :  { %s729_s25 = sld [smem:[#allocation3 + $0x3]] }
   0xa   :  { %s731_s26 = sld [smem:[#allocation3 + $0x4]] }
   0xb   :  { %s737_s29 = sld [smem:[#allocation3 + $0x5]] }
   0xc   :  { %s567_s27 = sshll.u32 %s723_s22, 1 }
   0xd   :  { %s149_s7 = scalar_lea.vmem %s1058_s2, %s567_s27  ;;  %s559_s8 = sshll.u32 %s725_s23, 1 }
   0xe   :  { %v150_v2 = vld [vmem:[%s149_s7] sm:$0x3]  ;;  %s35_s13 = scalar_lea.vmem %s1059_s3, %s559_s8  ;;  %s31_s16 = scalar_lea.vmem %s1058_s2, %s559_s8 }
   0xf   :  { %18 = vsyncpa [#allocation5], 0  ;;  %v151_v3 = vunpack.c.l.bf16 %v150_v2  ;;  %v36_v4 = vld [vmem:[%s35_s13] sm:$0x3]  ;;  %s153_s19 = scalar_lea.vmem %s1059_s3, %s567_s27  ;;  %s563_s20 = sshll.u32 %s727_s24, 1  ;;  %vm43_vm0 = vcmask 59392  }
  0x10   :  { %v32_v5 = vld [vmem:[%s31_s16] sm:$0x3]  ;;  %v37_v6 = vunpack.c.l.bf16 %v36_v4  ;;  %s95_s28 = scalar_lea.vmem %s1059_s3, %s563_s20  ;;  %s91_s7 = scalar_lea.vmem %s1058_s2, %s563_s20  ;;  %v612_v29 = vld [vmem:[%s1057_s1 + $0x4] ss:$0 sm:$0xff]  ;;  %v611_v33 = vld [vmem:[%s1057_s1 + $0x3] ss:$0 sm:$0xff] }
  0x11   :  { %v33_v7 = vunpack.c.l.bf16 %v32_v5  ;;  %v154_v8 = vld [vmem:[%s153_s19] sm:$0x3]  ;;  %v160_v9 = vmul.f32 %v608_v0, %v151_v3  ;;  %s571_s8 = sshll.u32 %s729_s25, 1  ;;  %s575_s27 = sshll.u32 %s731_s26, 1  ;;  %v613_v42 = vld [vmem:[%s1057_s1 + $0x5] ss:$0 sm:$0xff] }
  0x12   :  { %v155_v10 = vunpack.c.l.bf16 %v154_v8  ;;  %v96_v11 = vld [vmem:[%s95_s28] sm:$0x3]  ;;  %v47_v13 = vmul.f32 %v609_v1, %v37_v6  ;;  %s265_s13 = scalar_lea.vmem %s1058_s2, %s575_s27  ;;  %s211_s16 = scalar_lea.vmem %s1059_s3, %s571_s8  ;;  %v615_v56 = vld [vmem:[%s1057_s1 + $0x7] ss:$0 sm:$0xff]  ;;  %v614_v60 = vld [vmem:[%s1057_s1 + $0x6] ss:$0 sm:$0xff] }
  0x13   :  { %v92_v12 = vld [vmem:[%s91_s7] sm:$0x3]  ;;  %v42_v14 = vmul.f32 %v609_v1, %v33_v7  ;;  %v97_v15 = vunpack.c.l.bf16 %v96_v11  ;;  %v161_v18 = vsel %vm43_vm0, %v160_v9, 0.0  ;;  %s207_s19 = scalar_lea.vmem %s1058_s2, %s571_s8  ;;  %s579_s20 = sshll.u32 %s737_s29, 1 }
  0x14   :  { %v610_v16 = vld [vmem:[%s1057_s1 + $0x1] ss:$0 sm:$0xff]  ;;  %v93_v17 = vunpack.c.l.bf16 %v92_v12  ;;  %162 = vadd.xlane.f32.xlu2 %v161_v18  ;;  %v48_v19 = vsel %vm43_vm0, %v47_v13, 0.0  ;;  %v164_v21 = vmul.f32 %v608_v0, %v155_v10  ;;  %s782_s21 = sld [smem:[#allocation3 + $0x7]]  ;;  %s327_s10 = scalar_lea.vmem %s1059_s3, %s579_s20 }
  0x15   :  { %v44_v20 = vsel %vm43_vm0, %v42_v14, 0.0  ;;  %49 = vadd.xlane.f32.xlu1 %v48_v19  ;;  %v106_v22 = vmul.f32 %v610_v16, %v97_v15  ;;  %v266_v24 = vld [vmem:[%s265_s13] sm:$0x3]  ;;  %s788_s30 = sld [smem:[#allocation3 + $0x6]]  ;;  %s323_s13 = scalar_lea.vmem %s1058_s2, %s579_s20 }
  0x16   :  { %45 = vadd.xlane.f32.xlu0 %v44_v20  ;;  %v102_v23 = vmul.f32 %v610_v16, %v93_v17  ;;  %v212_v25 = vld [vmem:[%s211_s16] sm:$0x3]  ;;  %v165_v27 = vsel %vm43_vm0, %v164_v21, 0.0  ;;  %v267_v28 = vunpack.c.l.bf16 %v266_v24  ;;  %s269_s16 = scalar_lea.vmem %s1059_s3, %s575_s27  ;;  %s561_s1 = sshll.u32 %s725_s23, 2 }
  0x17   :  { %v208_v26 = vld [vmem:[%s207_s19] sm:$0x3]  ;;  %v107_v30 = vsel %vm43_vm0, %v106_v22, 0.0  ;;  %v213_v32 = vunpack.c.l.bf16 %v212_v25  ;;  %s569_s19 = sshll.u32 %s723_s22, 2  ;;  %s573_s7 = sshll.u32 %s729_s25, 2 }
  0x18   :  { %v103_v31 = vsel %vm43_vm0, %v102_v23, 0.0  ;;  %v209_v34 = vunpack.c.l.bf16 %v208_v26  ;;  %v276_v35 = vmul.f32 %v612_v29, %v267_v28  ;;  %v328_v38 = vld [vmem:[%s327_s10] sm:$0x3]  ;;  %s157_s0 = scalar_lea.vmem %s1060_s4, %s569_s19  ;;  %s215_s9 = scalar_lea.vmem %s1060_s4, %s573_s7 }
  0x19   :  { %v222_v36 = vmul.f32 %v611_v33, %v213_v32  ;;  %v324_v39 = vld [vmem:[%s323_s13] sm:$0x3]  ;;  %v329_v43 = vunpack.c.l.bf16 %v328_v38  ;;  %s577_s10 = sshll.u32 %s731_s26, 2  ;;  %s502_s25 = sshll.u32 %s1061_s5, 4  ;;  %s503_s25 = int_to_ptr.hbm [resolvable:$true] %s502_s25 }
  0x1a   :  { %v218_v37 = vmul.f32 %v611_v33, %v209_v34  ;;  %v270_v40 = vld [vmem:[%s269_s16] sm:$0x3]  ;;  %s587_s17 = sshll.u32 %s782_s21, 1  ;;  %v277_v41 = vsel %vm43_vm0, %v276_v35, 0.0  ;;  %v325_v46 = vunpack.c.l.bf16 %v324_v39 }
  0x1b   :  { %s583_s20 = sshll.u32 %s788_s30, 1  ;;  %v223_v44 = vsel %vm43_vm0, %v222_v36, 0.0  ;;  %v271_v47 = vunpack.c.l.bf16 %v270_v40  ;;  %s439_s28 = scalar_lea.vmem %s1058_s2, %s587_s17  ;;  %v338_v48 = vmul.f32 %v613_v42, %v329_v43 }
  0x1c   :  { %166 = vadd.xlane.f32.xlu2 %v165_v27  ;;  %v219_v45 = vsel %vm43_vm0, %v218_v37, 0.0  ;;  %s381_s8 = scalar_lea.vmem %s1058_s2, %s583_s20  ;;  %s385_s11 = scalar_lea.vmem %s1059_s3, %s583_s20  ;;  %v334_v49 = vmul.f32 %v613_v42, %v325_v46  ;;  %v440_v51 = vld [vmem:[%s439_s28] sm:$0x3] }
  0x1d   :  { %108 = vadd.xlane.f32.xlu1 %v107_v30  ;;  %v280_v50 = vmul.f32 %v612_v29, %v271_v47  ;;  %v382_v52 = vld [vmem:[%s381_s8] sm:$0x3]  ;;  %v339_v54 = vsel %vm43_vm0, %v338_v48, 0.0  ;;  %v441_v55 = vunpack.c.l.bf16 %v440_v51  ;;  %s443_s18 = scalar_lea.vmem %s1059_s3, %s587_s17  ;;  %s39_s17 = scalar_lea.vmem %s1060_s4, %s561_s1 }
  0x1e   :  { %104 = vadd.xlane.f32.xlu0 %v103_v31  ;;  %v386_v53 = vld [vmem:[%s385_s11] sm:$0x3]  ;;  %v335_v57 = vsel %vm43_vm0, %v334_v49, 0.0  ;;  %v383_v59 = vunpack.c.l.bf16 %v382_v52  ;;  %s565_s20 = sshll.u32 %s727_s24, 2  ;;  %s581_s11 = sshll.u32 %s737_s29, 2 }
  0x1f   :  { %v281_v58 = vsel %vm43_vm0, %v280_v50, 0.0  ;;  %v387_v61 = vunpack.c.l.bf16 %v386_v53  ;;  %v450_v62 = vmul.f32 %v615_v56, %v441_v55  ;;  %v444_v1 = vld [vmem:[%s443_s18] sm:$0x3]  ;;  %s99_s6 = scalar_lea.vmem %s1060_s4, %s565_s20  ;;  %s273_s2 = scalar_lea.vmem %s1060_s4, %s577_s10 }
  0x20   :  { %v392_v63 = vmul.f32 %v614_v60, %v383_v59  ;;  %v445_v5 = vunpack.c.l.bf16 %v444_v1  ;;  %s331_s15 = scalar_lea.vmem %s1060_s4, %s581_s11  ;;  %s585_s16 = sshll.u32 %s788_s30, 2 }
  0x21   :  { %v396_v0 = vmul.f32 %v614_v60, %v387_v61  ;;  %v451_v2 = vsel %vm43_vm0, %v450_v62, 0.0  ;;  %s389_s18 = scalar_lea.vmem %s1060_s4, %s585_s16  ;;  %s589_s1 = sshll.u32 %s782_s21, 2 }
  0x22   :  { %v393_v3 = vsel %vm43_vm0, %v392_v63, 0.0  ;;  %v454_v6 = vmul.f32 %v615_v56, %v445_v5  ;;  %s689_s24 = smov [#allocation4]  }
  0x23   :  { %v397_v4 = vsel %vm43_vm0, %v396_v0, 0.0  ;;  %s500_s28 = sshll.u32 %s689_s24, 4  ;;  %s501_s28 = int_to_ptr.vmem [resolvable:$true] %s500_s28 }
  0x24   :  { %278 = vadd.xlane.f32.xlu2 %v277_v41  ;;  %v455_v7 = vsel %vm43_vm0, %v454_v6, 0.0 }
  0x25   :  { %224 = vadd.xlane.f32.xlu1 %v223_v44 }
  0x26   :  { %220 = vadd.xlane.f32.xlu0 %v219_v45 }
  0x2c   :  { %340 = vadd.xlane.f32.xlu2 %v339_v54 }
  0x2d   :  { %336 = vadd.xlane.f32.xlu1 %v335_v57 }
  0x2e   :  { %282 = vadd.xlane.f32.xlu0 %v281_v58 }
  0x34   :  { %452 = vadd.xlane.f32.xlu2 %v451_v2 }
  0x35   :  { %398 = vadd.xlane.f32.xlu1 %v397_v4 }
  0x36   :  { %394 = vadd.xlane.f32.xlu0 %v393_v3 }
  0x3e   :  { %456 = vadd.xlane.f32.xlu0 %v455_v7 }
  0x87   :  { %v843_v8 = vpop.xlane.xlu2 %162 }
  0x88   :  { %v50_v9 = vpop.xlane.xlu1 %49  ;;  %vm168_vm2 = vcmp.ne.f32.partialorder %v843_v8, 0.0 }
  0x89   :  { %v845_v10 = vpop.xlane.xlu0 %45  ;;  %v169_v58 = vsel %vm168_vm2, %v843_v8, 1.0 }
  0x8a   :  { %vm51_vm1 = vcmp.ne.f32.partialorder %v845_v10, 0.0 }
  0x8b   :  { %v53_v11 = vsel %vm51_vm1, %v50_v9, 1.0  ;;  %v52_v29 = vsel %vm51_vm1, %v845_v10, 1.0 }
  0x8c   :  { %616 = vrcp.f32 %v53_v11  ;;  %v65_v20 = vand.u32 2147483648, %v53_v11  ;;  %v63_v22 = vand.u32 2147483647, %v53_v11  ;;  %vm59_vm5 = vweird.f32 %v53_v11 }
  0x8e   :  { %v66_v30 = vor.u32 1.1754944e-38, %v65_v20  ;;  %vm64_vm8 = vcmp.eq.f32.partialorder %v63_v22, 8.507059e+37 }
  0x8f   :  { %v167_v12 = vpop.xlane.xlu2 %166 }
  0x90   :  { %v170_v13 = vsel %vm168_vm2, %v167_v12, 1.0  ;;  %v109_v14 = vpop.xlane.xlu1 %108 }
  0x91   :  { %v853_v15 = vpop.xlane.xlu0 %104  ;;  %618 = vrcp.f32 %v170_v13  ;;  %v182_v36 = vand.u32 2147483648, %v170_v13  ;;  %v180_v40 = vand.u32 2147483647, %v170_v13  ;;  %vm176_vm10 = vweird.f32 %v170_v13 }
  0x92   :  { %v617_v16 = vpop.eup %616  ;;  %vm110_vm3 = vcmp.ne.f32.partialorder %v853_v15, 0.0 }
  0x93   :  { %v55_v17 = vmul.f32 %v617_v16, %v53_v11  ;;  %v112_v18 = vsel %vm110_vm3, %v109_v14, 1.0  ;;  %vm60_vm4 = vweird.f32 %v617_v16  ;;  %v183_v45 = vor.u32 1.1754944e-38, %v182_v36 }
  0x94   :  { %620 = vrcp.f32 %v112_v18  ;;  %vm61_vm6 = vmor %vm59_vm5, %vm60_vm4  ;;  %v124_v43 = vand.u32 2147483648, %v112_v18  ;;  %v122_v47 = vand.u32 2147483647, %v112_v18  ;;  %vm181_vm14 = vcmp.eq.f32.partialorder %v180_v40, 8.507059e+37 }
  0x95   :  { %v56_v19 = vsub.f32 1.0, %v55_v17  ;;  %vm118_vm15 = vweird.f32 %v112_v18  ;;  %v111_v59 = vsel %vm110_vm3, %v853_v15, 1.0 }
  0x96   :  { %v125_v56 = vor.u32 1.1754944e-38, %v124_v43  ;;  %vm123_vm5 = vcmp.eq.f32.partialorder %v122_v47, 8.507059e+37 }
  0x97   :  { %v57_v21 = vmul.f32 %v617_v16, %v56_v19  ;;  %v619_v23 = vpop.eup %618  ;;  %v858_v24 = vpop.xlane.xlu2 %278  ;;  %v40_v19 = vld [vmem:[%s39_s17] sm:$0x7]  ;;  %s447_s17 = scalar_lea.vmem %s1060_s4, %s589_s1 }
  0x98   :  { %v172_v26 = vmul.f32 %v619_v23, %v170_v13  ;;  %v225_v27 = vpop.xlane.xlu1 %224  ;;  %vm177_vm9 = vweird.f32 %v619_v23  ;;  %vm284_vm11 = vcmp.ne.f32.partialorder %v858_v24, 0.0 }
  0x99   :  { %v58_v25 = vadd.f32 %v617_v16, %v57_v21  ;;  %v860_v28 = vpop.xlane.xlu0 %220  ;;  %vm872_vm12 = vmor %vm176_vm10, %vm177_vm9  ;;  %v910_v12 = vsel %vm284_vm11, %v858_v24, 1.0  ;;  %v390_v24 = vld [vmem:[%s389_s18] sm:$0x7] }
  0x9a   :  { %vm226_vm7 = vcmp.ne.f32.partialorder %v860_v28, 0.0  ;;  %v621_v31 = vpop.eup %620  ;;  %v173_v33 = vsub.f32 1.0, %v172_v26 }
  0x9b   :  { %v62_v32 = vsel %vm61_vm6, %v617_v16, %v58_v25  ;;  %v868_v34 = vsel %vm226_vm7, %v225_v27, 1.0  ;;  %v114_v37 = vmul.f32 %v621_v31, %v112_v18  ;;  %vm119_vm13 = vweird.f32 %v621_v31 }
  0x9c   :  { %v67_v35 = vsel %vm64_vm8, %v66_v30, %v62_v32  ;;  %622 = vrcp.f32 %v868_v34  ;;  %v174_v39 = vmul.f32 %v619_v23, %v173_v33  ;;  %vm120_vm4 = vmor %vm118_vm15, %vm119_vm13  ;;  %v240_v4 = vand.u32 2147483648, %v868_v34 }
  0x9d   :  { %v68_v38 = vmul.f32 %v67_v35, %v52_v29  ;;  %v115_v41 = vsub.f32 1.0, %v114_v37  ;;  %v238_v6 = vand.u32 2147483647, %v868_v34  ;;  %vm74_vm8 = vcmask 2048  }
  0x9e   :  { %v175_v42 = vadd.f32 %v619_v23, %v174_v39  ;;  %vm234_vm9 = vweird.f32 %v868_v34  ;;  %v227_v16 = vsel %vm226_vm7, %v860_v28, 1.0  ;;  %v241_v17 = vor.u32 1.1754944e-38, %v240_v4 }
  0x9f   :  { %624 = vlog2.f32 %v68_v38  ;;  %v116_v46 = vmul.f32 %v621_v31, %v115_v41  ;;  %v341_v54 = vpop.xlane.xlu2 %340  ;;  %vm239_vm13 = vcmp.eq.f32.partialorder %v238_v6, 8.507059e+37 }
  0xa0   :  { %v179_v48 = vsel %vm872_vm12, %v619_v23, %v175_v42  ;;  %v878_v49 = vpop.xlane.xlu1 %336 }
  0xa1   :  { %v283_v50 = vpop.xlane.xlu0 %282  ;;  %v117_v52 = vadd.f32 %v621_v31, %v116_v46  ;;  %vm342_vm0 = vcmp.ne.f32.partialorder %v878_v49, 0.0  ;;  %v184_v55 = vsel %vm181_vm14, %v183_v45, %v179_v48 }
  0xa2   :  { %v623_v51 = vpop.eup %622  ;;  %v883_v53 = vsel %vm284_vm11, %v283_v50, 1.0  ;;  %v896_v0 = vsel %vm342_vm0, %v341_v54, 1.0  ;;  %v185_v1 = vmul.f32 %v184_v55, %v169_v58 }
  0xa3   :  { %v230_v57 = vmul.f32 %v623_v51, %v868_v34  ;;  %626 = vrcp.f32 %v883_v53  ;;  %v121_v60 = vsel %vm120_vm4, %v621_v31, %v117_v52  ;;  %vm235_vm6 = vweird.f32 %v623_v51  ;;  %v158_v52 = vld [vmem:[%s157_s0] sm:$0x7] }
  0xa4   :  { %v126_v62 = vsel %vm123_vm5, %v125_v56, %v121_v60  ;;  %628 = vrcp.f32 %v896_v0  ;;  %vm236_vm10 = vmor %vm234_vm9, %vm235_vm6  ;;  %vm292_vm14 = vweird.f32 %v883_v53  ;;  %v296_v30 = vand.u32 2147483647, %v883_v53 }
  0xa5   :  { %v625_v61 = vpop.eup %624  ;;  %v231_v63 = vsub.f32 1.0, %v230_v57  ;;  %v127_v3 = vmul.f32 %v126_v62, %v111_v59  ;;  %v298_v31 = vand.u32 2147483648, %v883_v53  ;;  %v354_v35 = vand.u32 2147483647, %v896_v0 }
  0xa6   :  { %v70_v2 = vmul.f32 0.6931472, %v625_v61  ;;  %v356_v38 = vand.u32 2147483648, %v896_v0  ;;  %vm955_vm5 = vcmp.eq.f32.partialorder %v296_v30, 8.507059e+37  ;;  %vm350_vm6 = vweird.f32 %v896_v0  ;;  %v100_v61 = vld [vmem:[%s99_s6] sm:$0x7] }
  0xa7   :  { %v232_v5 = vmul.f32 %v623_v51, %v231_v63  ;;  %630 = vlog2.f32 %v127_v3  ;;  %v929_v26 = vpop.xlane.xlu2 %452  ;;  %v299_v54 = vor.u32 1.1754944e-38, %v298_v31  ;;  %v448_v63 = vld [vmem:[%s447_s17] sm:$0x7] }
  0xa8   :  { %v71_v7 = vsub.f32 0.0, %v70_v2  ;;  %v399_v14 = vpop.xlane.xlu1 %398  ;;  %632 = vlog2.f32 %v185_v1  ;;  %vm458_vm15 = vcmp.ne.f32.partialorder %v929_v26, 0.0  ;;  %v357_v58 = vor.u32 1.1754944e-38, %v356_v38 }
  0xa9   :  { %v904_v9 = vpop.eup %626  ;;  %v233_v11 = vadd.f32 %v623_v51, %v232_v5  ;;  %v912_v13 = vpop.xlane.xlu0 %394  ;;  %v459_v44 = vsel %vm458_vm15, %v929_v26, 1.0 }
  0xaa   :  { %v288_v18 = vmul.f32 %v904_v9, %v883_v53  ;;  %vm400_vm12 = vcmp.ne.f32.partialorder %v912_v13, 0.0  ;;  %v72_v22 = vsel %vm51_vm1, %v71_v7, 0.0  ;;  %v932_v27 = vpop.eup %628  ;;  %vm293_vm1 = vweird.f32 %v904_v9 }
  0xab   :  { %v237_v20 = vsel %vm236_vm10, %v623_v51, %v233_v11  ;;  %v923_v21 = vsel %vm400_vm12, %v399_v14, 1.0  ;;  %v73_v32 = vmul.f32 %v72_v22, %v40_v19  ;;  %v346_v34 = vmul.f32 %v932_v27, %v896_v0  ;;  %vm951_vm4 = vmor %vm292_vm14, %vm293_vm1  ;;  %v216_v14 = vld [vmem:[%s215_s9] sm:$0x7] }
  0xac   :  { %v242_v23 = vsel %vm239_vm13, %v241_v17, %v237_v20  ;;  %v289_v25 = vsub.f32 1.0, %v288_v18  ;;  %634 = vrcp.f32 %v923_v21  ;;  %vm351_vm9 = vweird.f32 %v932_v27 }
  0xad   :  { %v243_v29 = vmul.f32 %v242_v23, %v227_v16  ;;  %v631_v10 = vpop.eup %630  ;;  %v347_v40 = vsub.f32 1.0, %v346_v34  ;;  %v75_v41 = vsel %vm74_vm8, %v73_v32, 0.0  ;;  %vm973_vm10 = vcmp.eq.f32.partialorder %v354_v35, 8.507059e+37  ;;  %vm987_vm13 = vmor %vm350_vm6, %vm351_vm9 }
  0xae   :  { %v290_v33 = vmul.f32 %v904_v9, %v289_v25  ;;  %v633_v36 = vpop.eup %632  ;;  %v129_v37 = vmul.f32 0.6931472, %v631_v10  ;;  %76 = vadd.xlane.f32.xlu1 %v75_v41  ;;  %v412_v59 = vand.u32 2147483647, %v923_v21  ;;  %v414_v5 = vand.u32 2147483648, %v923_v21 }
  0xaf   :  { %636 = vlog2.f32 %v243_v29  ;;  %v187_v42 = vmul.f32 0.6931472, %v633_v36  ;;  %v348_v50 = vmul.f32 %v932_v27, %v347_v40  ;;  %v343_v11 = vsel %vm342_vm0, %v878_v49, 1.0  ;;  %v274_v41 = vld [vmem:[%s273_s2] sm:$0x7] }
  0xb0   :  { %v291_v39 = vadd.f32 %v904_v9, %v290_v33  ;;  %v130_v46 = vsub.f32 0.0, %v129_v37  ;;  %vm413_vm1 = vcmp.eq.f32.partialorder %v412_v59, 8.507059e+37  ;;  %v401_v29 = vsel %vm400_vm12, %v912_v13, 1.0 }
  0xb1   :  { %v457_v45 = vpop.xlane.xlu0 %456  ;;  %v188_v53 = vsub.f32 0.0, %v187_v42  ;;  %v349_v57 = vadd.f32 %v932_v27, %v348_v50 }
  0xb2   :  { %v635_v47 = vpop.eup %634  ;;  %v295_v48 = vsel %vm951_vm4, %v904_v9, %v291_v39  ;;  %v970_v51 = vsel %vm458_vm15, %v457_v45, 1.0  ;;  %v131_v3 = vsel %vm110_vm3, %v130_v46, 0.0  ;;  %vm408_vm3 = vweird.f32 %v923_v21 }
  0xb3   :  { %v404_v56 = vmul.f32 %v635_v47, %v923_v21  ;;  %638 = vrcp.f32 %v970_v51  ;;  %v189_v60 = vsel %vm168_vm2, %v188_v53, 0.0  ;;  %v300_v8 = vsel %vm955_vm5, %v299_v54, %v295_v48 }
  0xb4   :  { %v190_v2 = vmul.f32 %v189_v60, %v158_v52  ;;  %v353_v0 = vsel %vm987_vm13, %v932_v27, %v349_v57  ;;  %vm409_vm2 = vweird.f32 %v635_v47  ;;  %v132_v15 = vmul.f32 %v131_v3, %v100_v61 }
  0xb5   :  { %v637_v62 = vpop.eup %636  ;;  %v405_v1 = vsub.f32 1.0, %v404_v56  ;;  %v301_v9 = vmul.f32 %v300_v8, %v910_v12  ;;  %v358_v17 = vsel %vm973_vm10, %v357_v58, %v353_v0  ;;  %vm410_vm14 = vmor %vm408_vm3, %vm409_vm2  ;;  %v415_v12 = vor.u32 1.1754944e-38, %v414_v5 }
  0xb6   :  { %v245_v4 = vmul.f32 0.6931472, %v637_v62  ;;  %v191_v7 = vsel %vm74_vm8, %v190_v2, 0.0  ;;  %v133_v20 = vsel %vm74_vm8, %v132_v15, 0.0  ;;  %v359_v22 = vmul.f32 %v358_v17, %v343_v11 }
  0xb7   :  { %v406_v6 = vmul.f32 %v635_v47, %v405_v1  ;;  %192 = vadd.xlane.f32.xlu0 %v191_v7  ;;  %640 = vlog2.f32 %v301_v9  ;;  %134 = vadd.xlane.f32.xlu2 %v133_v20  ;;  %v472_v32 = vand.u32 2147483648, %v970_v51  ;;  %v470_v34 = vand.u32 2147483647, %v970_v51 }
  0xb8   :  { %v246_v16 = vsub.f32 0.0, %v245_v4  ;;  %642 = vlog2.f32 %v359_v22  ;;  %vm466_vm4 = vweird.f32 %v970_v51 }
  0xb9   :  { %v639_v18 = vpop.eup %638  ;;  %v407_v19 = vadd.f32 %v635_v47, %v406_v6  ;;  %v473_v39 = vor.u32 1.1754944e-38, %v472_v32  ;;  %vm471_vm6 = vcmp.eq.f32.partialorder %v470_v34, 8.507059e+37 }
  0xba   :  { %v462_v23 = vmul.f32 %v639_v18, %v970_v51  ;;  %v247_v21 = vsel %vm226_vm7, %v246_v16, 0.0  ;;  %vm467_vm7 = vweird.f32 %v639_v18 }
  0xbb   :  { %v411_v25 = vsel %vm410_vm14, %v635_v47, %v407_v19  ;;  %v248_v27 = vmul.f32 %v247_v21, %v216_v14  ;;  %vm468_vm5 = vmor %vm466_vm4, %vm467_vm7  ;;  %v332_v47 = vld [vmem:[%s331_s15] sm:$0x7] }
  0xbc   :  { %v463_v30 = vsub.f32 1.0, %v462_v23  ;;  %v416_v31 = vsel %vm413_vm1, %v415_v12, %v411_v25 }
  0xbd   :  { %v249_v10 = vsel %vm74_vm8, %v248_v27, 0.0  ;;  %v417_v33 = vmul.f32 %v416_v31, %v401_v29  ;;  %v641_v35 = vpop.eup %640 }
  0xbe   :  { %v464_v28 = vmul.f32 %v639_v18, %v463_v30  ;;  %250 = vadd.xlane.f32.xlu1 %v249_v10  ;;  %v303_v37 = vmul.f32 0.6931472, %v641_v35  ;;  %v643_v38 = vpop.eup %642 }
  0xbf   :  { %644 = vlog2.f32 %v417_v33  ;;  %v361_v43 = vmul.f32 0.6931472, %v643_v38 }
  0xc0   :  { %v465_v36 = vadd.f32 %v639_v18, %v464_v28  ;;  %v304_v42 = vsub.f32 0.0, %v303_v37 }
  0xc1   :  { %v362_v48 = vsub.f32 0.0, %v361_v43 }
  0xc2   :  { %v469_v40 = vsel %vm468_vm5, %v639_v18, %v465_v36  ;;  %v305_v46 = vsel %vm284_vm11, %v304_v42, 0.0  ;;  %vm493_vm11 = vcmask 0  }
  0xc3   :  { %v474_v45 = vsel %vm471_vm6, %v473_v39, %v469_v40  ;;  %v306_v52 = vmul.f32 %v305_v46, %v274_v41  ;;  %v363_v53 = vsel %vm342_vm0, %v362_v48, 0.0 }
  0xc4   :  { %v475_v50 = vmul.f32 %v474_v45, %v459_v44  ;;  %v364_v56 = vmul.f32 %v363_v53, %v332_v47 }
  0xc5   :  { %v645_v51 = vpop.eup %644  ;;  %v307_v55 = vsel %vm74_vm8, %v306_v52, 0.0 }
  0xc6   :  { %v419_v54 = vmul.f32 0.6931472, %v645_v51  ;;  %646 = vlog2.f32 %v475_v50  ;;  %308 = vadd.xlane.f32.xlu2 %v307_v55  ;;  %v365_v58 = vsel %vm74_vm8, %v364_v56, 0.0 }
  0xc7   :  { %366 = vadd.xlane.f32.xlu0 %v365_v58 }
  0xc8   :  { %v420_v57 = vsub.f32 0.0, %v419_v54 }
  0xca   :  { %v421_v59 = vsel %vm400_vm12, %v420_v57, 0.0 }
  0xcb   :  { %v422_v60 = vmul.f32 %v421_v59, %v390_v24 }
  0xcc   :  { %v647_v61 = vpop.eup %646 }
  0xcd   :  { %v423_v49 = vsel %vm74_vm8, %v422_v60, 0.0  ;;  %v477_v62 = vmul.f32 0.6931472, %v647_v61 }
  0xce   :  { %424 = vadd.xlane.f32.xlu1 %v423_v49 }
  0xcf   :  { %v478_v1 = vsub.f32 0.0, %v477_v62 }
  0xd1   :  { %v479_v2 = vsel %vm458_vm15, %v478_v1, 0.0 }
  0xd2   :  { %v480_v3 = vmul.f32 %v479_v2, %v448_v63 }
  0xd4   :  { %v481_v8 = vsel %vm74_vm8, %v480_v3, 0.0 }
  0xd5   :  { %482 = vadd.xlane.f32.xlu2 %v481_v8 }
 0x121   :  { %v77_v13 = vpop.xlane.xlu1 %76 }
 0x122   :  { %v78_v4 = vrot.slane %v77_v13, 4 }
 0x124   :  { %v79_v0 = vadd.f32 %v78_v4, %v77_v13 }
 0x126   :  { %v80_v5 = vrot.slane %v79_v0, 2 }
 0x128   :  { %v81_v7 = vadd.f32 %v80_v5, %v79_v0 }
 0x12a   :  { %v193_v6 = vpop.xlane.xlu0 %192  ;;  %v135_v9 = vpop.xlane.xlu2 %134  ;;  %v82_v11 = vrot.slane %v81_v7, 1 }
 0x12b   :  { %v194_v15 = vrot.slane %v193_v6, 4  ;;  %v136_v16 = vrot.slane %v135_v9, 4 }
 0x12c   :  { %v83_v17 = vadd.f32 %v82_v11, %v81_v7 }
 0x12d   :  { %v195_v14 = vadd.f32 %v194_v15, %v193_v6  ;;  %v137_v19 = vadd.f32 %v136_v16, %v135_v9 }
 0x12e   :  { %590 = vpush %v83_v17 }
 0x12f   :  { %v196_v18 = vrot.slane %v195_v14, 2  ;;  %v138_v20 = vrot.slane %v137_v19, 2 }
 0x131   :  { %v251_v26 = vpop.xlane.xlu1 %250  ;;  %v197_v12 = vadd.f32 %v196_v18, %v195_v14  ;;  %v139_v21 = vadd.f32 %v138_v20, %v137_v19 }
 0x132   :  { %v252_v22 = vrot.slane %v251_v26, 4 }
 0x133   :  { %v198_v25 = vrot.slane %v197_v12, 1  ;;  %v140_v29 = vrot.slane %v139_v21, 1 }
 0x134   :  { %v253_v23 = vadd.f32 %v252_v22, %v251_v26 }
 0x135   :  { %v199_v30 = vadd.f32 %v198_v25, %v197_v12  ;;  %v141_v31 = vadd.f32 %v140_v29, %v139_v21 }
 0x136   :  { %v254_v27 = vrot.slane %v253_v23, 2 }
 0x137   :  { %592 = vpush %v141_v31 }
 0x138   :  { %v255_v32 = vadd.f32 %v254_v27, %v253_v23  ;;  %594 = vpush %v199_v30 }
 0x139   :  { %v309_v33 = vpop.xlane.xlu2 %308 }
 0x13a   :  { %v256_v10 = vrot.slane %v255_v32, 1  ;;  %v310_v28 = vrot.slane %v309_v33, 4  ;;  %v367_v35 = vpop.xlane.xlu0 %366 }
 0x13b   :  { %v368_v37 = vrot.slane %v367_v35, 4 }
 0x13c   :  { %v257_v34 = vadd.f32 %v256_v10, %v255_v32  ;;  %v311_v36 = vadd.f32 %v310_v28, %v309_v33 }
 0x13d   :  { %v369_v39 = vadd.f32 %v368_v37, %v367_v35 }
 0x13e   :  { %596 = vpush %v257_v34  ;;  %v312_v38 = vrot.slane %v311_v36, 2 }
 0x13f   :  { %v370_v41 = vrot.slane %v369_v39, 2 }
 0x140   :  { %v313_v43 = vadd.f32 %v312_v38, %v311_v36 }
 0x141   :  { %v425_v40 = vpop.xlane.xlu1 %424  ;;  %v371_v44 = vadd.f32 %v370_v41, %v369_v39 }
 0x142   :  { %v426_v42 = vrot.slane %v425_v40, 4  ;;  %v314_v46 = vrot.slane %v313_v43, 1 }
 0x143   :  { %v372_v50 = vrot.slane %v371_v44, 1 }
 0x144   :  { %v427_v45 = vadd.f32 %v426_v42, %v425_v40  ;;  %v315_v48 = vadd.f32 %v314_v46, %v313_v43 }
 0x145   :  { %v373_v52 = vadd.f32 %v372_v50, %v371_v44 }
 0x146   :  { %v428_v47 = vrot.slane %v427_v45, 2  ;;  %598 = vpush %v315_v48 }
 0x147   :  { %600 = vpush %v373_v52 }
 0x148   :  { %v429_v51 = vadd.f32 %v428_v47, %v427_v45  ;;  %v483_v53 = vpop.xlane.xlu2 %482 }
 0x149   :  { %v484_v54 = vrot.slane %v483_v53, 4 }
 0x14a   :  { %v430_v55 = vrot.slane %v429_v51, 1 }
 0x14b   :  { %v485_v56 = vadd.f32 %v484_v54, %v483_v53 }
 0x14c   :  { %v431_v24 = vadd.f32 %v430_v55, %v429_v51 }
 0x14d   :  { %v486_v57 = vrot.slane %v485_v56, 2 }
 0x14e   :  { %602 = vpush %v431_v24 }
 0x14f   :  { %v487_v58 = vadd.f32 %v486_v57, %v485_v56 }
 0x151   :  { %v488_v59 = vrot.slane %v487_v58, 1 }
 0x153   :  { %v489_v60 = vadd.f32 %v488_v59, %v487_v58 }
 0x155   :  { %604 = vpush %v489_v60 }
 0x15f   :  { %s591_s4 = spop %590 }
 0x160   :  { %v85_v49 = vstv %s591_s4 }
 0x168   :  { %s593_s21 = spop %592 }
 0x169   :  { %v143_v61 = vstv %s593_s21  ;;  %s595_s19 = spop %594 }
 0x16a   :  { %v144_v62 = vadd.f32 %v143_v61, %v85_v49  ;;  %v201_v63 = vstv %s595_s19 }
 0x16c   :  { %v202_v2 = vadd.f32 %v201_v63, %v144_v62 }
 0x16f   :  { %s597_s20 = spop %596 }
 0x170   :  { %v259_v1 = vstv %s597_s20 }
 0x171   :  { %v260_v8 = vadd.f32 %v259_v1, %v202_v2 }
 0x177   :  { %s599_s22 = spop %598 }
 0x178   :  { %v317_v3 = vstv %s599_s22  ;;  %s601_s27 = spop %600 }
 0x179   :  { %v318_v13 = vadd.f32 %v317_v3, %v260_v8  ;;  %v375_v4 = vstv %s601_s27 }
 0x17b   :  { %v376_v5 = vadd.f32 %v375_v4, %v318_v13 }
 0x17f   :  { %s603_s0 = spop %602 }
 0x180   :  { %v433_v0 = vstv %s603_s0 }
 0x181   :  { %v434_v6 = vadd.f32 %v433_v0, %v376_v5 }
 0x186   :  { %s605_s8 = spop %604 }
 0x187   :  { %v491_v7 = vstv %s605_s8 }
 0x188   :  { %v492_v15 = vadd.f32 %v491_v7, %v434_v6 }
 0x18a   :  { %494 = vst.msk [vmem:[#allocation4] sm:$0x1] %vm493_vm11, %v492_v15 }
 0x18b   :  { %505 = dma.vmem_to_hbm [thread:$0]  %s501_s28, 16, %s503_s25, [#allocation5]  }
 0x18c   :  { %686 = dma.done.wait [#allocation5], 16  }
 0x18d   :  { %687 = vsyncadd [#allocation5], 4294967280 }
 0x18e   :  { %510 = vsyncpa [#allocation5], 1 }

</bundles_post_ra>
